<compile_context>
chip_gen: v7x
topology: tpu7x:2x2x1
jax: 0.10.0
libtpu: 0.0.40
codegen_flags: <defaults>
</compile_context>

<pallas_src>
import jax
import jax.numpy as jnp
from jax import lax
from jax.experimental import pallas as pl
from jax.experimental.pallas import tpu as pltpu


def _reduced_xca_kernel(x_ref, wqkv_ref, wproj_ref, bproj_ref, mask_ref, o_ref):
    x = x_ref[0]            # (N, D)
    wqkv = wqkv_ref[...]    # (D, 3D); q columns pre-scaled by `scale`
    D = x.shape[1]

    # Fused, lane-dense qkv projection: (N, D) @ (D, 3D) -> (N, 3D).
    qkv = jnp.dot(x, wqkv, preferred_element_type=jnp.float32)
    q = qkv[:, 0 * D:1 * D]          # (N, D), already scaled
    k = qkv[:, 1 * D:2 * D]          # (N, D)
    v = qkv[:, 2 * D:3 * D]          # (N, D)

    # One transpose for all heads (instead of H per-head q.T transposes).
    qT = q.T                          # (D, N)

    # All-head cross-covariance attention in one matmul; the block-diagonal
    # additive mask (-1e30 off-block) restricts each row's softmax to its head.
    attn = jnp.dot(qT, k, preferred_element_type=jnp.float32)   # (D, D)
    attn = attn + mask_ref[...]
    attn = attn - jnp.max(attn, axis=-1, keepdims=True)
    attn = jnp.exp(attn)                                        # off-block -> 0
    attn = attn * pl.reciprocal(jnp.sum(attn, axis=-1, keepdims=True),
                                approx=True)
    # attn_drop is a no-op at p = 0.0 (eval)

    # out[n, i] = sum_j v[n, j] * attn[i, j]  ==  v @ attn^T, expressed as a
    # dot_general contracting the rhs last dim so no explicit transpose is made.
    out_cat = lax.dot_general(v, attn, (((1,), (1,)), ((), ())),
                              preferred_element_type=jnp.float32)  # (N, D)

    # Single lane-dense output projection + bias; one store per batch.
    proj = jnp.dot(out_cat, wproj_ref[...], preferred_element_type=jnp.float32)
    o_ref[0] = (proj + bproj_ref[...]).astype(o_ref.dtype)
    # proj_drop is a no-op at p = 0.0 (eval)


def reduced_xca_pallas(x, w_qkv, w_proj, b_proj, *, num_heads, input_resolution):
    """x: (B, N, D) f32. w_qkv: (3D, D), w_proj: (D, D), b_proj: (D,) (torch layout)."""
    B, N, D = x.shape
    H = num_heads
    assert D % H == 0
    C = D // H
    scale = float(input_resolution[0] * input_resolution[1]) ** (-0.5)

    # torch Linear: y = x @ W.T.  Fused qkv weight -> (D, 3D); output feature
    # index = qkv_idx*D + head*C + c, exactly the module's '(qkv H C)' layout.
    wqkv = jnp.asarray(w_qkv, jnp.float32).T                  # (D, 3D)
    # Fold the attention scale into the q columns: attn = (scale*q)^T @ k.
    wqkv = jnp.concatenate([wqkv[:, :D] * scale, wqkv[:, D:]], axis=1)
    wproj = jnp.asarray(w_proj, jnp.float32).T                # (D, D)
    bproj = jnp.asarray(b_proj, jnp.float32).reshape(1, D)

    # Block-diagonal additive softmax mask: 0 within a head's C x C block,
    # -1e30 across heads (exp underflows to exactly 0 after max-subtraction).
    head_id = jnp.arange(D, dtype=jnp.int32) // C
    attn_mask = jnp.where(head_id[:, None] == head_id[None, :],
                          0.0, -1e30).astype(jnp.float32)     # (D, D)

    # TODO(synk): for very large N on v7x (64 MiB VMEM), tile N with a
    # two-phase (accumulate q^T k over N-tiles, then apply) scheme; not needed
    # at these sizes.
    return pl.pallas_call(
        _reduced_xca_kernel,
        out_shape=jax.ShapeDtypeStruct((B, N, D), x.dtype),
        grid=(B,),
        in_specs=[
            pl.BlockSpec((1, N, D), lambda b: (b, 0, 0)),     # x (per batch)
            pl.BlockSpec((D, 3 * D), lambda b: (0, 0)),       # fused qkv weight (resident)
            pl.BlockSpec((D, D), lambda b: (0, 0)),           # proj weight (resident)
            pl.BlockSpec((1, D), lambda b: (0, 0)),           # proj bias (resident)
            pl.BlockSpec((D, D), lambda b: (0, 0)),           # block-diag mask (resident)
        ],
        out_specs=pl.BlockSpec((1, N, D), lambda b: (b, 0, 0)),
        compiler_params=pltpu.CompilerParams(
            dimension_semantics=("parallel",),
            vmem_limit_bytes=32 * 1024 * 1024,
        ),
    )(x, wqkv, wproj, bproj, attn_mask)


def reduced_xca_reference(x, w_qkv, w_proj, b_proj, *, num_heads, input_resolution):
    """Pure-JAX mirror of the PyTorch forward, for correctness checking."""
    B, N, D = x.shape
    H = num_heads
    C = D // H
    scale = float(input_resolution[0] * input_resolution[1]) ** (-0.5)

    qkv = x @ w_qkv.T                                          # (B, N, 3D)
    qkv = qkv.reshape(B, N, 3, H, C).transpose(2, 0, 3, 4, 1)  # (3, B, H, C, N)
    qt, kt, vt = qkv[0], qkv[1], qkv[2]
    k = kt.transpose(0, 1, 3, 2)                               # (B, H, N, C)
    attn = jnp.einsum('bhcn,bhnd->bhcd', qt, k) * scale        # (B, H, C, C)
    attn = jax.nn.softmax(attn, axis=-1)
    out = jnp.einsum('bhcd,bhdn->bhcn', attn, vt)              # (B, H, C, N)
    out = out.transpose(0, 3, 1, 2).reshape(B, N, D)           # 'B H C N -> B N (H C)'
    return out @ w_proj.T + b_proj


if __name__ == "__main__":
    # Small shapes consistent with the module:
    #   dim=32, num_heads=4 -> head_dim=8, input_resolution=(4,4) -> N=16, batch=2
    B, dim, num_heads = 2, 32, 4
    input_resolution = (4, 4)
    N = input_resolution[0] * input_resolution[1]

    key = jax.random.PRNGKey(0)
    kx, kqkv, kproj, kb = jax.random.split(key, 4)
    x = jax.random.normal(kx, (B, N, dim), dtype=jnp.float32)
    # qkv_bias=False (module default); proj has bias.
    w_qkv = 0.1 * jax.random.normal(kqkv, (3 * dim, dim), dtype=jnp.float32)
    w_proj = 0.1 * jax.random.normal(kproj, (dim, dim), dtype=jnp.float32)
    b_proj = 0.1 * jax.random.normal(kb, (dim,), dtype=jnp.float32)

    out = reduced_xca_pallas(x, w_qkv, w_proj, b_proj,
                             num_heads=num_heads,
                             input_resolution=input_resolution)
    out = jax.block_until_ready(out)

    ref = reduced_xca_reference(x, w_qkv, w_proj, b_proj,
                                num_heads=num_heads,
                                input_resolution=input_resolution)
    assert out.shape == (B, N, dim)
    assert jnp.allclose(out, ref, atol=2e-2, rtol=2e-2), float(jnp.max(jnp.abs(out - ref)))

    print("KERNEL_OK")
</pallas_src>

<mosaic_0001>
module attributes {stable_mosaic.version = 11 : i64} {
  func.func @_reduced_xca_kernel(%arg0: i32, %arg1: memref<1x16x32xf32, #tpu.memory_space<vmem>>, %arg2: memref<32x96xf32, #tpu.memory_space<vmem>>, %arg3: memref<32x32xf32, #tpu.memory_space<vmem>>, %arg4: memref<1x32xf32, #tpu.memory_space<vmem>>, %arg5: memref<32x32xf32, #tpu.memory_space<vmem>>, %arg6: memref<1x16x32xf32, #tpu.memory_space<vmem>>) attributes {dimension_semantics = [#tpu.dimension_semantics<parallel>], iteration_bounds = array<i64: 2>, scalar_prefetch = 0 : i64, scratch_operands = 0 : i64, tpu.core_type = #tpu.core_type<tc>, window_params = [{transform_indices = @transform_0, window_bounds = array<i64: 1, 16, 32>}, {pipeline_mode = #tpu.pipeline_mode<synchronous>, transform_indices = @transform_1, window_bounds = array<i64: 32, 96>}, {pipeline_mode = #tpu.pipeline_mode<synchronous>, transform_indices = @transform_2, window_bounds = array<i64: 32, 32>}, {pipeline_mode = #tpu.pipeline_mode<synchronous>, transform_indices = @transform_3, window_bounds = array<i64: 1, 32>}, {pipeline_mode = #tpu.pipeline_mode<synchronous>, transform_indices = @transform_4, window_bounds = array<i64: 32, 32>}, {transform_indices = @transform_5, window_bounds = array<i64: 1, 16, 32>}]} {
    %c0 = arith.constant 0 : index
    %c0_0 = arith.constant 0 : index
    %c0_1 = arith.constant 0 : index
    %0 = vector.load %arg1[%c0, %c0_0, %c0_1] : memref<1x16x32xf32, #tpu.memory_space<vmem>>, vector<1x16x32xf32>
    %1 = vector.shape_cast %0 : vector<1x16x32xf32> to vector<16x32xf32>
    %c0_2 = arith.constant 0 : index
    %c0_3 = arith.constant 0 : index
    %2 = vector.load %arg2[%c0_2, %c0_3] : memref<32x96xf32, #tpu.memory_space<vmem>>, vector<32x96xf32>
    %cst = arith.constant dense<0.000000e+00> : vector<16x96xf32>
    %3 = tpu.matmul %1, %2, %cst {dimension_numbers = #tpu.dot_dimension_numbers<[1], [0], [0], [1], [0, 0, 1, 1], [], []>} : vector<16x32xf32>, vector<32x96xf32>, vector<16x96xf32> -> vector<16x96xf32>
    %4 = vector.extract_strided_slice %3 {offsets = [0, 0], sizes = [16, 32], strides = [1, 1]} : vector<16x96xf32> to vector<16x32xf32>
    %5 = vector.extract_strided_slice %3 {offsets = [0, 32], sizes = [16, 32], strides = [1, 1]} : vector<16x96xf32> to vector<16x32xf32>
    %6 = vector.extract_strided_slice %3 {offsets = [0, 64], sizes = [16, 32], strides = [1, 1]} : vector<16x96xf32> to vector<16x32xf32>
    %7 = tpu.transpose %4, [1, 0] : vector<16x32xf32> -> vector<32x16xf32>
    %cst_4 = arith.constant dense<0.000000e+00> : vector<32x32xf32>
    %8 = tpu.matmul %7, %5, %cst_4 {dimension_numbers = #tpu.dot_dimension_numbers<[1], [0], [0], [1], [0, 0, 1, 1], [], []>} : vector<32x16xf32>, vector<16x32xf32>, vector<32x32xf32> -> vector<32x32xf32>
    %c0_5 = arith.constant 0 : index
    %c0_6 = arith.constant 0 : index
    %9 = vector.load %arg5[%c0_5, %c0_6] : memref<32x32xf32, #tpu.memory_space<vmem>>, vector<32x32xf32>
    %10 = arith.addf %8, %9 : vector<32x32xf32>
    %cst_7 = arith.constant dense<0xFF800000> : vector<32xf32>
    %11 = vector.multi_reduction <maximumf>, %10, %cst_7 [1] : vector<32x32xf32> to vector<32xf32>
    %12 = vector.shape_cast %11 : vector<32xf32> to vector<32x1xf32>
    %13 = vector.broadcast %12 : vector<32x1xf32> to vector<32x32xf32>
    %14 = arith.subf %10, %13 : vector<32x32xf32>
    %15 = math.exp %14 : vector<32x32xf32>
    %cst_8 = arith.constant dense<0.000000e+00> : vector<32xf32>
    %16 = vector.multi_reduction <add>, %15, %cst_8 [1] : vector<32x32xf32> to vector<32xf32>
    %17 = vector.shape_cast %16 : vector<32xf32> to vector<32x1xf32>
    %18 = tpu.reciprocal %17 {approx = true} : vector<32x1xf32> -> vector<32x1xf32>
    %19 = vector.broadcast %18 : vector<32x1xf32> to vector<32x32xf32>
    %20 = arith.mulf %15, %19 : vector<32x32xf32>
    %cst_9 = arith.constant dense<0.000000e+00> : vector<16x32xf32>
    %21 = tpu.matmul %6, %20, %cst_9 {dimension_numbers = #tpu.dot_dimension_numbers<[1], [1], [0], [0], [0, 0, 1, 0], [], []>} : vector<16x32xf32>, vector<32x32xf32>, vector<16x32xf32> -> vector<16x32xf32>
    %c0_10 = arith.constant 0 : index
    %c0_11 = arith.constant 0 : index
    %22 = vector.load %arg3[%c0_10, %c0_11] : memref<32x32xf32, #tpu.memory_space<vmem>>, vector<32x32xf32>
    %cst_12 = arith.constant dense<0.000000e+00> : vector<16x32xf32>
    %23 = tpu.matmul %21, %22, %cst_12 {dimension_numbers = #tpu.dot_dimension_numbers<[1], [0], [0], [1], [0, 0, 1, 1], [], []>} : vector<16x32xf32>, vector<32x32xf32>, vector<16x32xf32> -> vector<16x32xf32>
    %c0_13 = arith.constant 0 : index
    %c0_14 = arith.constant 0 : index
    %24 = vector.load %arg4[%c0_13, %c0_14] : memref<1x32xf32, #tpu.memory_space<vmem>>, vector<1x32xf32>
    %25 = vector.broadcast %24 : vector<1x32xf32> to vector<16x32xf32>
    %26 = arith.addf %23, %25 : vector<16x32xf32>
    %c0_15 = arith.constant 0 : index
    %c0_16 = arith.constant 0 : index
    %c0_17 = arith.constant 0 : index
    %27 = vector.load %arg6[%c0_15, %c0_16, %c0_17] : memref<1x16x32xf32, #tpu.memory_space<vmem>>, vector<1x16x32xf32>
    %28 = vector.shape_cast %27 : vector<1x16x32xf32> to vector<16x32xf32>
    %29 = vector.shape_cast %26 : vector<16x32xf32> to vector<1x16x32xf32>
    tpu.vector_store %arg6[%c0_15, %c0_16, %c0_17], %29 {strides = array<i32>} : memref<1x16x32xf32, #tpu.memory_space<vmem>>, vector<1x16x32xf32>,
    return
  }
  func.func @transform_0(%arg0: i32) -> (i32, i32, i32) {
    %c0_i32 = arith.constant 0 : i32
    %c0_i32_0 = arith.constant 0 : i32
    %c0_i32_1 = arith.constant 0 : i32
    return %arg0, %c0_i32, %c0_i32_0 : i32, i32, i32
  }
  func.func @transform_1(%arg0: i32) -> (i32, i32) {
    %c0_i32 = arith.constant 0 : i32
    %c0_i32_0 = arith.constant 0 : i32
    %c0_i32_1 = arith.constant 0 : i32
    return %c0_i32, %c0_i32_0 : i32, i32
  }
  func.func @transform_2(%arg0: i32) -> (i32, i32) {
    %c0_i32 = arith.constant 0 : i32
    %c0_i32_0 = arith.constant 0 : i32
    %c0_i32_1 = arith.constant 0 : i32
    return %c0_i32, %c0_i32_0 : i32, i32
  }
  func.func @transform_3(%arg0: i32) -> (i32, i32) {
    %c0_i32 = arith.constant 0 : i32
    %c0_i32_0 = arith.constant 0 : i32
    %c0_i32_1 = arith.constant 0 : i32
    return %c0_i32, %c0_i32_0 : i32, i32
  }
  func.func @transform_4(%arg0: i32) -> (i32, i32) {
    %c0_i32 = arith.constant 0 : i32
    %c0_i32_0 = arith.constant 0 : i32
    %c0_i32_1 = arith.constant 0 : i32
    return %c0_i32, %c0_i32_0 : i32, i32
  }
  func.func @transform_5(%arg0: i32) -> (i32, i32, i32) {
    %c0_i32 = arith.constant 0 : i32
    %c0_i32_0 = arith.constant 0 : i32
    %c0_i32_1 = arith.constant 0 : i32
    return %arg0, %c0_i32, %c0_i32_0 : i32, i32, i32
  }
}

</mosaic_0001>

<bundles_post_ra>
// kernel: tpu_custom_call.1
= control target key start
LH: loop header
LB: loop body
LE: loop exit
PB: predicated region body
PF: predicated region fallthrough
CT: control target
= control target key end

     0   :  { %10 = vsyncpa [#allocation3], 0  ;;  %s1641_s0 = inlined_call_operand.hbm [shape: f32[2,16,32], index: 0, kind: input, shape index: {}]   ;;  %s1642_s1 = inlined_call_operand.hbm [shape: f32[32,96], index: 1, kind: input, shape index: {}]   ;;  %s1643_s2 = inlined_call_operand.hbm [shape: f32[32,32], index: 2, kind: input, shape index: {}]   ;;  %s1644_s3 = inlined_call_operand.vmem [shape: f32[1,32], index: 3, kind: input, shape index: {}]   ;;  %s1645_s4 = inlined_call_operand.hbm [shape: f32[32,32], index: 4, kind: input, shape index: {}]   ;;  %s1646_s5 = inlined_call_operand.hbm [shape: f32[2,16,32], index: 5, kind: output, shape index: {}]  }
   0x1   :  { %12 = vsyncpa [#allocation3 + $0x1], 0 }
   0x2   :  { %13 = vsyncpa [#allocation6], 0 }
   0x3   :  { %14 = vsyncpa [#allocation9], 0 }
   0x4   :  { %15 = vsyncpa [#allocation4], 0 }
   0x5   :  { %17 = vsyncpa [#allocation4 + $0x1], 0  ;;  %s1338_s18 = smov 0   ;;  %s1340_s19 = smov 0  }
   0x6   :  { %s1342_s20 = smov 0   ;;  %s1344_s21 = smov 0  }
   0x7 LB: > { %s1359_s22 = sadd.s32 4294967295, %s1295_s21   ;;  %s866_s23 = sadd.s32 4294967294, %s1295_s21   ;;  %s1295_s21 = sphi %s1344_s21, %s1669_s21   ;;  %s1291_s20 = sphi %s1342_s20, %s1668_s20   ;;  %s1287_s19 = sphi %s1340_s19, %s1667_s19   ;;  %s1283_s18 = sphi %s1338_s18, %s1666_s18  }
   0x8   : > { %p43_p0 = scmp.ne.s32.totalorder %s1287_s19, %s1283_s18  ;;  %p1647_p1 = scmp.eq.s32.totalorder %s1359_s22, 0 }
   0x9   : > { %p157_p3 = scmp.eq.s32.totalorder %s866_s23, 1  ;;  %p867_p5 = scmp.ge.s32.totalorder %s1295_s21, 1 }
   0xa   : > { %p1368_p4 = por %p1647_p1, %p43_p0  ;;  %p164_p7 = scmp.lt.s32.totalorder %s1295_s21, 3 }
   0xb   : > { %p1373_p6 = por %p157_p3, %p43_p0  ;;  %s1297_s27 = smov [#allocation5]  }
   0xc   : > { %s1650_s24 = scalar_select %p1368_p4, 1, 0 }
   0xd   : > { %s1651_s25 = scalar_select %p1373_p6, 1, 0 }
   0xe   : > { %p1378_p8 = pnand %p867_p5, %p164_p7  ;;  %s176_s28 = sshll.u32 %s1297_s27, 4  ;;  %s1382_s28 = int_to_ptr.vmem [resolvable:$true] %s176_s28 }
   0xf   : > { %s1298_s30 = smov [#allocation7]   ;;  %s1299_s7 = smov [#allocation8]  }
  0x10   : > { %s1652_s26 = scalar_select %p1378_p8, 1, 0 }
  0x11   : > { %p1018_p9 = pneg %p1378_p8  ;;  %s189_s6 = sshll.u32 %s1298_s30, 4  ;;  %s1393_s6 = int_to_ptr.vmem [resolvable:$true] %s189_s6 }
  0x12   : > { %s1395_s8 = sshll.u32 %s1299_s7, 4  ;;  %s1107_s11 = scalar_lea.hbm %s1642_s1, 512  ;;  %s206_s8 = int_to_ptr.vmem [resolvable:$true] %s1395_s8 }
  0x13   : > { %p1389_p11 = pnand %p1018_p9, %p1647_p1  ;;  %p1108_p12 = scmp.ne.s32.totalorder %s1642_s1, %s1107_s11 }
  0x14   : > { %p1114_p5 = scmp.lt.u32.totalorder %s1107_s11, %s1642_s1 }
  0x15   : > { %p1405_p13 = pneg %p1389_p11 }
  0x17   : > { %p1110_p0 = pnand %p1405_p13, %p1108_p12 }
  0x19   : > { %p1111_p3 = pneg %p1110_p0 }
  0x1b   : > { %p1116_p7 = pnand %p1114_p5, %p1111_p3 }
  0x1d   : > { %1119 = shalt.err (!%p1116_p7)
}
  0x1e   : > { %s1120_s17 = scalar_lea.vmem %s1382_s28, 512  ;;  %p1128_p2 = scmp.lt.s32.totalorder %s1382_s28, %s1382_s28 }
  0x1f   : > { %p1121_p9 = scmp.ne.s32.totalorder %s1382_s28, %s1120_s17  ;;  %p1129_p6 = scmp.lt.s32.totalorder %s1120_s17, %s1120_s17 }
  0x21   : > { %p1123_p10 = pnand %p1121_p9, %p1405_p13  ;;  %p1130_p12 = por %p1129_p6, %p1128_p2 }
  0x23   : > { %p1124_p1 = pneg %p1123_p10 }
  0x25   : > { %p1131_p0 = pnand %p1130_p12, %p1124_p1 }
  0x27   : > { %1134 = shalt.err (!%p1131_p0)
}
  0x28   : > { %s1300_s23 = smov 128   ;;  %s1301_s27 = smov 8  }
  0x29   : > { %1021 = dma.hbm_to_vmem [thread:$0]  (!%p1389_p11), %s1642_s1, 512, %s1382_s28, [#allocation6], %s1300_s23, %s1300_s23, %s1301_s27  }
  0x2a   : > { %s1135_s11 = scalar_lea.hbm %s1643_s2, 512 }
  0x2b   : > { %p1136_p1 = scmp.ne.s32.totalorder %s1643_s2, %s1135_s11  ;;  %p1142_p10 = scmp.lt.u32.totalorder %s1135_s11, %s1643_s2 }
  0x2d   : > { %p1138_p2 = pnand %p1136_p1, %p1405_p13 }
  0x2f   : > { %p1139_p6 = pneg %p1138_p2 }
  0x31   : > { %p1144_p3 = pnand %p1142_p10, %p1139_p6 }
  0x33   : > { %1147 = shalt.err (!%p1144_p3)
}
  0x34   : > { %s1148_s28 = scalar_lea.vmem %s1393_s6, 512  ;;  %p1156_p12 = scmp.lt.s32.totalorder %s1393_s6, %s1393_s6 }
  0x35   : > { %p1149_p5 = scmp.ne.s32.totalorder %s1393_s6, %s1148_s28  ;;  %p1157_p0 = scmp.lt.s32.totalorder %s1148_s28, %s1148_s28 }
  0x37   : > { %p1151_p7 = pnand %p1149_p5, %p1405_p13  ;;  %p1158_p1 = por %p1157_p0, %p1156_p12 }
  0x39   : > { %p1152_p9 = pneg %p1151_p7 }
  0x3b   : > { %p1159_p2 = pnand %p1158_p1, %p1152_p9 }
  0x3d   : > { %1162 = shalt.err (!%p1159_p2)
}
  0x3e   : > { %1024 = dma.hbm_to_vmem [thread:$0]  (!%p1389_p11), %s1643_s2, 512, %s1393_s6, [#allocation6], %s1300_s23, %s1300_s23, %s1301_s27  }
  0x3f   : > { %s1163_s10 = scalar_lea.hbm %s1645_s4, 512 }
  0x40   : > { %p1164_p6 = scmp.ne.s32.totalorder %s1645_s4, %s1163_s10  ;;  %p1170_p5 = scmp.lt.u32.totalorder %s1163_s10, %s1645_s4 }
  0x42   : > { %p1166_p10 = pnand %p1164_p6, %p1405_p13 }
  0x44   : > { %p1167_p3 = pneg %p1166_p10 }
  0x46   : > { %p1172_p7 = pnand %p1170_p5, %p1167_p3 }
  0x48   : > { %1175 = shalt.err (!%p1172_p7)
}
  0x49   : > { %s1176_s16 = scalar_lea.vmem %s206_s8, 512  ;;  %p1184_p1 = scmp.lt.s32.totalorder %s206_s8, %s206_s8 }
  0x4a   : > { %p1177_p9 = scmp.ne.s32.totalorder %s206_s8, %s1176_s16  ;;  %p1185_p2 = scmp.lt.s32.totalorder %s1176_s16, %s1176_s16 }
  0x4c   : > { %p1179_p12 = pnand %p1177_p9, %p1405_p13  ;;  %p1186_p4 = por %p1185_p2, %p1184_p1 }
  0x4e   : > { %p1180_p0 = pneg %p1179_p12 }
  0x50   : > { %p1187_p8 = pnand %p1186_p4, %p1180_p0 }
  0x52   : > { %1190 = shalt.err (!%p1187_p8)
}
  0x53   : > { %1027 = dma.hbm_to_vmem [thread:$0]  (!%p1389_p11), %s1645_s4, 512, %s206_s8, [#allocation9], %s1300_s23, %s1300_s23, %s1301_s27  }
  0x54   : > { %s1478_s14 = sadd.s32 1, %s1295_s21   ;;  %s30_s17 = sadd.s32 1, %s1291_s20 }
  0x55   : > { %s27_s29 = ssub.s32 %s1295_s21, %s1478_s14  ;;  %p37_p8 = scmp.ne.s32.totalorder %s1291_s20, %s1287_s19 }
  0x56   : > { %p28_p4 = scmp.eq.s32.totalorder %s27_s29, 0  ;;  %p38_p13 = scmp.eq.s32.totalorder %s1295_s21, 0 }
  0x57   : > { %p1039_p6 = scmp.lt.s32.totalorder %s1295_s21, 2  ;;  %p1655_p3 = scmp.eq.s32.totalorder %s1359_s22, 1 }
  0x58   : > { %s1488_s30 = scalar_select %p28_p4, %s1291_s20, %s30_s17  }
  0x59   : > { %p39_p10 = por %p38_p13, %p37_p8  ;;  %p1492_p5 = por %p1655_p3, %p37_p8 }
  0x5a   : > { %s219_s9 = sand.u32 1, %s1291_s20   ;;  %s901_s10 = sshll.u32 %s1295_s21, 8 }
  0x5b   : > { %s872_s8 = sshll.u32 %s219_s9, 4  ;;  %s1501_s13 = scalar_lea.hbm %s1641_s0, %s901_s10 }
  0x5c   : > { %s223_s15 = scalar_lea.vmem [#allocation2], %s872_s8  ;;  %p1503_p11 = pnand %p1039_p6, %p39_p10 }
  0x5d   : > { %s230_s16 = sshll.u32 %s223_s15, 4  ;;  %s1509_s28 = scalar_lea.sflag [#allocation3], %s219_s9  ;;  %s1507_s16 = int_to_ptr.vmem [resolvable:$true] %s230_s16 }
  0x5e   : > { %s1191_s29 = scalar_lea.hbm %s1501_s13, 256  ;;  %p1193_p9 = pneg %p1503_p11 }
  0x5f   : > { %p1192_p7 = scmp.ne.s32.totalorder %s1501_s13, %s1191_s29  ;;  %s1196_s8 = scalar_lea.hbm %s1641_s0, 512 }
  0x60   : > { %p1197_p1 = scmp.lt.u32.totalorder %s1501_s13, %s1641_s0  ;;  %p1198_p2 = scmp.lt.u32.totalorder %s1196_s8, %s1191_s29 }
  0x61   : > { %p1194_p12 = pnand %p1193_p9, %p1192_p7  ;;  %p1200_p8 = scmp.lt.u32.totalorder %s1191_s29, %s1501_s13 }
  0x62   : > { %p1199_p4 = por %p1198_p2, %p1197_p1 }
  0x63   : > { %p1195_p0 = pneg %p1194_p12 }
  0x64   : > { %p1201_p13 = por %p1200_p8, %p1199_p4 }
  0x66   : > { %p1202_p6 = pnand %p1201_p13, %p1195_p0 }
  0x68   : > { %1205 = shalt.err (!%p1202_p6)
}
  0x69   : > { %s1206_s9 = scalar_lea.vmem %s1507_s16, 256  ;;  %s1302_s15 = smov [#allocation2]  }
  0x6a   : > { %p1207_p10 = scmp.ne.s32.totalorder %s1507_s16, %s1206_s9  ;;  %s1211_s17 = sshll.u32 %s1302_s15, 4  ;;  %s1212_s17 = int_to_ptr.vmem [resolvable:$false] %s1211_s17 }
  0x6b   : > { %s1213_s10 = scalar_lea.vmem %s1212_s17, 512  ;;  %p1214_p12 = scmp.lt.s32.totalorder %s1507_s16, %s1212_s17 }
  0x6c   : > { %p1209_p3 = pnand %p1207_p10, %p1193_p9  ;;  %p1215_p1 = scmp.lt.s32.totalorder %s1213_s10, %s1206_s9 }
  0x6e   : > { %p1210_p7 = pneg %p1209_p3  ;;  %p1216_p2 = por %p1215_p1, %p1214_p12 }
  0x70   : > { %p1217_p4 = pnand %p1216_p2, %p1210_p7 }
  0x72   : > { %1220 = shalt.err (!%p1217_p4)
}
  0x73   : > { %1031 = dma.hbm_to_vmem [thread:$0]  (!%p1503_p11), %s1501_s13, 256, %s1507_s16, %s1509_s28, %s1300_s23, %s1300_s23, %s1301_s27  }
  0x74   : > { %p1658_p9 = scmp.ne.s32.totalorder %s1652_s26, 0 }
  0x75   : > { %s1543_s29 = sand.u32 (!%p1658_p9), 1, %s1287_s19   ;;  %p1659_p0 = scmp.ne.s32.totalorder (!%p1658_p9), %s1650_s24, 0 }
  0x76   : > { %242 = sbr.rel (%p1658_p9) target bundleno = 1521 (0x5f1), region = 40  ;;  %s876_s8 = sshll.u32 (!%p1658_p9), %s1543_s29, 4 }
  0x77   : > { %s245_s11 = scalar_lea.sflag (!%p1658_p9), [#allocation3], %s1543_s29  ;;  %s248_s6 = scalar_lea.vmem (!%p1658_p9), [#allocation2], %s876_s8 }
  0x7d   : > { %1266 = dma.done.wait (%p1659_p0), %s245_s11, 256  }
  0x7e   : > { %1268 = vsyncadd (%p1659_p0), %s245_s11, 4294967040  ;;  %p1660_p11 = scmp.eq.s32.totalorder %s1359_s22, 0 }
  0x80   : > { %1270 = dma.done.wait (%p1660_p11), [#allocation6], 1024   ;;  %p1661_p8 = pmov %p1660_p11 }
  0x82   : > { %1272 = vsyncadd (%p1661_p8), [#allocation6], 4294966272  ;;  %p1662_p13 = pmov %p1661_p8 }
  0x83   : > { %p1663_p6 = pmov %p1661_p8 }
  0x84   : > { %1274 = dma.done.wait (%p1662_p13), [#allocation9], 512  }
  0x85   : > { %1276 = vsyncadd (%p1663_p6), [#allocation9], 4294966784  ;;  %vm293_vm0 = vcmask 261120   ;;  %v289_v0 = vld [vmem:[#allocation5] sm:$0xff]  ;;  %v290_v1 = vld [vmem:[#allocation5 + $0x8] sm:$0xff]  ;;  %s1303_s24 = smov 96  }
  0x86   : > { %v291_v2 = vld [vmem:[#allocation5 + $0x10] sm:$0xff]  ;;  %v970_v3 = vpack.c.bf16 %v290_v1, %v289_v0  ;;  %v292_v4 = vld [vmem:[#allocation5 + $0x18] sm:$0xff]  ;;  %s1304_s26 = smov 64   ;;  %vm419_vm1 = vcmask 130048   ;;  %v408_v19 = vld [vmem:[#allocation8 + $0x8] sm:$0xff]  ;;  %s286_s23 = scalar_lea.vmem [#allocation10], %s876_s8 }
  0x87   : > { %v287_v5 = vld [vmem:[%s248_s6] sm:$0xff]  ;;  %v974_v6 = vpack.c.bf16 %v292_v4, %v291_v2  ;;  %v288_v7 = vld [vmem:[%s248_s6 + $0x8] sm:$0xff]  ;;  %vm983_vm2 = vmpackc.low %vm293_vm0, %vm293_vm0  ;;  %s764_s27 = sshll.u32 %s286_s23, 4  ;;  %s902_s28 = sshll.u32 %s1359_s22, 8  ;;  %s1590_s27 = int_to_ptr.vmem [resolvable:$true] %s764_s27 }
  0x88   : > { %935 = vmatprep.mubr.msk.f32.mxu0 %vm293_vm0, %v287_v5  ;;  %971 = vmatprep.subr.bf16.mxu0 %v970_v3  ;;  %v407_v21 = vld [vmem:[#allocation8] sm:$0xff]  ;;  %v409_v27 = vld [vmem:[#allocation8 + $0x10] sm:$0xff]  ;;  %v410_v29 = vld [vmem:[#allocation8 + $0x18] sm:$0xff]  ;;  %s1595_s15 = scalar_lea.hbm %s1646_s5, %s902_s28  ;;  %s751_s17 = scalar_lea.sflag [#allocation4], %s1543_s29 }
  0x89   : > { %973 = vmatpush3.bf16.msra.mxu0 %v970_v3  ;;  %v656_v55 = vld [vmem:[#allocation7] sm:$0xff]  ;;  %v657_v56 = vld [vmem:[#allocation7 + $0x8] sm:$0xff]  ;;  %v658_v57 = vld [vmem:[#allocation7 + $0x10] sm:$0xff]  ;;  %s1221_s22 = scalar_lea.vmem %s1590_s27, 256  ;;  %s1305_s10 = smov [#allocation10]  }
  0x8a   : > { %975 = vmatprep.subr.bf16.mxu0 %v974_v6  ;;  %v994_v58 = vpack.c.bf16 %v657_v56, %v656_v55  ;;  %v659_v59 = vld [vmem:[#allocation7 + $0x18] sm:$0xff]  ;;  %p1222_p10 = scmp.ne.s32.totalorder %s1590_s27, %s1221_s22  ;;  %s1225_s8 = sshll.u32 %s1305_s10, 4  ;;  %s1226_s8 = int_to_ptr.vmem [resolvable:$false] %s1225_s8 }
  0x8b   : > { %v998_v60 = vpack.c.bf16 %v659_v59, %v658_v57  ;;  %s1227_s11 = scalar_lea.vmem %s1226_s8, 512  ;;  %p1228_p12 = scmp.lt.s32.totalorder %s1590_s27, %s1226_s8 }
  0x8c   : > { %p1223_p3 = pnand %p1222_p10, %p1492_p5  ;;  %p1229_p1 = scmp.lt.s32.totalorder %s1227_s11, %s1221_s22 }
  0x8d   : > { %977 = vmatpush3.bf16.msra.mxu0 %v974_v6 }
  0x8e   : > { %995 = vmatprep.subr.bf16.mxu0 %v994_v58  ;;  %p1224_p7 = pneg %p1223_p3  ;;  %p1230_p2 = por %p1229_p1, %p1228_p12 }
  0x90   : > { %936 = vmatmul.mubr.msk.f32.vlgmr.msra.gmra.mrb[0].mxu0 %vm293_vm0, %v288_v7  ;;  %p1231_p4 = pnand %p1230_p2, %p1224_p7 }
  0x91   : > { %997 = vmatpush3.bf16.msra.mxu0 %v994_v58 }
  0x92   : > { %999 = vmatprep.subr.bf16.mxu0 %v998_v60 }
  0x95   : > { %1001 = vmatpush3.bf16.msra.mxu0 %v998_v60 }
 0x163   : > { %v937_v8 = vpop.f32.mrb[0].mxu0 }
 0x164   : > { %v1563_v9 = vpop.f32.mrb[1].mxu0 }
 0x165   : > { %v1086_v10 = vpack.i.bf16 %v937_v8, %v1563_v9 }
 0x167   : > { %1087 = vrot.lane.b32.xlu0 %v1086_v10, %s1303_s24 }
 0x185   : > { %375 = vxpose.xlu0.b32.start [1/2] (short) (narrow) %v1563_v9, 32 }
 0x189   : > { %376 = vxpose.xlu0.b32.end [2/2] (short) (narrow) %v937_v8, 32 }
 0x1ba   : > { %563 = vrot.lane.b32.xlu0 %v937_v8, %s1304_s26 }
 0x1d9   : > { %v1088_v11 = vpop.permute.xlu0 %1087 }
 0x1da   : > { %v1090_v12 = vunpack.i.h.bf16 %v1088_v11  ;;  %v1089_v13 = vunpack.i.l.bf16 %v1088_v11 }
 0x1dc   : > { %v978_v14 = vpack.c.bf16 %v1090_v12, %v1089_v13 }
 0x1de   : > { %979 = vmatprep.subr.bf16.mxu1 %v978_v14 }
 0x1df   : > { %981 = vmatpush3.bf16.msra.mxu1 %v978_v14 }
 0x205   : > { %v391_v15 = vpop.trf.xlu0 }
 0x206   : > { %942 = vmatprep.mubr.msk.f32.mxu1 %vm419_vm1, %v391_v15  ;;  %v893_v15 = vld [vmem:[%s1644_s3] ss:$0 sm:$0xff] }
 0x209   : > { %v392_v16 = vpop.trf.xlu0 }
 0x20a   : > { %943 = vmatmul.mubr.msk.f32.vlgmr.msra.gmra.mrb[0].mxu1 %vm419_vm1, %v392_v16 }
 0x20d   : > { %v393_v17 = vpop.trf.xlu0 }
 0x20e   : > { %945 = vmatprep.mubr.msk.f32.mxu1 %vm419_vm1, %v393_v17 }
 0x211   : > { %v394_v18 = vpop.trf.xlu0 }
 0x212   : > { %946 = vmatmul.mubr.msk.f32.gmra.mrb[2].mxu1 %vm419_vm1, %v394_v18 }
 0x22c   : > { %v564_v12 = vpop.permute.xlu0 %563 }
 0x2dd   : > { %v944_v20 = vpop.f32.mrb[0].mxu1 }
 0x2de   : > { %v504_v22 = vadd.f32 %v944_v20, %v408_v19  ;;  %v498_v23 = vpop.f32.mrb[1].mxu1 }
 0x2df   : > { %v499_v24 = vadd.f32 %v498_v23, %v407_v21 }
 0x2e0   : > { %v520_v25 = vsel %vm293_vm0, %v504_v22, -inf }
 0x2e1   : > { %521 = vmax.xlane.f32.xlu1 %v520_v25  ;;  %v517_v26 = vsel %vm293_vm0, %v499_v24, -inf }
 0x2e5   : > { %v947_v28 = vpop.f32.mrb[2].mxu1  ;;  %518 = vmax.xlane.f32.xlu1 %v517_v26 }
 0x2e6   : > { %v508_v30 = vpop.f32.mrb[3].mxu1  ;;  %v514_v32 = vadd.f32 %v947_v28, %v410_v29 }
 0x2e7   : > { %v509_v31 = vadd.f32 %v508_v30, %v409_v27 }
 0x2e8   : > { %v526_v34 = vsel %vm293_vm0, %v514_v32, -inf }
 0x2e9   : > { %v523_v33 = vsel %vm293_vm0, %v509_v31, -inf }
 0x2ea   : > { %524 = vmax.xlane.f32.xlu1 %v523_v33 }
 0x2ee   : > { %527 = vmax.xlane.f32.xlu1 %v526_v34 }
 0x36e   : > { %v522_v35 = vpop.xlane.xlu1 %521 }
 0x36f   : > { %v530_v36 = vsub.f32 %v504_v22, %v522_v35 }
 0x371   : > { %v535_v37 = vmul.f32 1.442695, %v530_v36 }
 0x372   : > { %v519_v38 = vpop.xlane.xlu1 %518 }
 0x373   : > { %1091 = vpow2.f32 %v535_v37  ;;  %v529_v39 = vsub.f32 %v499_v24, %v519_v38 }
 0x375   : > { %v533_v40 = vmul.f32 1.442695, %v529_v39 }
 0x377   : > { %1093 = vpow2.f32 %v533_v40  ;;  %v525_v41 = vpop.xlane.xlu1 %524 }
 0x378   : > { %v531_v42 = vsub.f32 %v509_v31, %v525_v41 }
 0x37a   : > { %v537_v46 = vmul.f32 1.442695, %v531_v42 }
 0x37b   : > { %v528_v43 = vpop.xlane.xlu1 %527 }
 0x37c   : > { %v532_v44 = vsub.f32 %v514_v32, %v528_v43 }
 0x37d   : > { %v1092_v45 = vpop.eup %1091 }
 0x37e   : > { %v539_v47 = vmul.f32 1.442695, %v532_v44  ;;  %v544_v48 = vsel %vm293_vm0, %v1092_v45, 0.0 }
 0x37f   : > { %545 = vadd.xlane.f32.xlu1 %v544_v48 }
 0x380   : > { %1095 = vpow2.f32 %v539_v47 }
 0x381   : > { %v1094_v49 = vpop.eup %1093  ;;  %1097 = vpow2.f32 %v537_v46 }
 0x382   : > { %v541_v50 = vsel %vm293_vm0, %v1094_v49, 0.0 }
 0x383   : > { %542 = vadd.xlane.f32.xlu1 %v541_v50 }
 0x38a   : > { %v1096_v51 = vpop.eup %1095 }
 0x38b   : > { %v550_v52 = vsel %vm293_vm0, %v1096_v51, 0.0  ;;  %v1098_v53 = vpop.eup %1097 }
 0x38c   : > { %551 = vadd.xlane.f32.xlu1 %v550_v52  ;;  %v547_v54 = vsel %vm293_vm0, %v1098_v53, 0.0 }
 0x390   : > { %548 = vadd.xlane.f32.xlu1 %v547_v54 }
 0x3a1   : > { %561 = vrot.lane.b32.xlu1 %v1563_v9, %s1304_s26 }
 0x40c   : > { %v546_v61 = vpop.xlane.xlu1 %545 }
 0x40d   : > { %1099 = vrcp.f32 %v546_v61 }
 0x410   : > { %v543_v62 = vpop.xlane.xlu1 %542 }
 0x411   : > { %1101 = vrcp.f32 %v543_v62 }
 0x417   : > { %v1100_v63 = vpop.eup %1099 }
 0x418   : > { %v558_v3 = vmul.f32 %v1100_v63, %v1092_v45 }
 0x419   : > { %v552_v0 = vpop.xlane.xlu1 %551 }
 0x41a   : > { %1103 = vrcp.f32 %v552_v0 }
 0x41b   : > { %v1102_v1 = vpop.eup %1101 }
 0x41c   : > { %v557_v2 = vmul.f32 %v1102_v1, %v1094_v49 }
 0x41d   : > { %v549_v4 = vpop.xlane.xlu1 %548 }
 0x41e   : > { %1105 = vrcp.f32 %v549_v4  ;;  %v982_v5 = vpack.c.bf16 %v558_v3, %v557_v2 }
 0x420   : > { %984 = vmatprep.subr.msk.bf16.mxu1 %vm983_vm2, %v982_v5 }
 0x421   : > { %987 = vmatpush3.bf16.xpose.msk.msra.mxu1 %vm983_vm2, %v982_v5  ;;  %v562_v6 = vpop.permute.xlu1 %561 }
 0x422   : > { %956 = vmatprep.mubr.msk.f32.mxu1 %vm293_vm0, %v562_v6 }
 0x424   : > { %v1104_v7 = vpop.eup %1103 }
 0x425   : > { %v560_v10 = vmul.f32 %v1104_v7, %v1096_v51 }
 0x428   : > { %v1106_v8 = vpop.eup %1105 }
 0x429   : > { %v559_v9 = vmul.f32 %v1106_v8, %v1098_v53 }
 0x42b   : > { %v988_v11 = vpack.c.bf16 %v560_v10, %v559_v9 }
 0x42d   : > { %990 = vmatprep.subr.msk.bf16.mxu1 %vm983_vm2, %v988_v11 }
 0x42e   : > { %993 = vmatpush3.bf16.xpose.msk.msra.mxu1 %vm983_vm2, %v988_v11 }
 0x435   : > { %957 = vmatmul.mubr.msk.f32.vlgmr.msra.gmra.mrb[4].mxu1 %vm293_vm0, %v564_v12 }
 0x508   : > { %v958_v13 = vpop.f32.mrb[4].mxu1 }
 0x509   : > { %v647_v14 = vpop.f32.mrb[5].mxu1 }
 0x50a   : > { %967 = vmatprep.mubr.msk.f32.mxu0 %vm293_vm0, %v647_v14 }
 0x50b   : > { %968 = vmatmul.mubr.msk.f32.vlgmr.msra.gmra.mrb[2].mxu0 %vm293_vm0, %v958_v13 }
 0x5de   : > { %v969_v16 = vpop.f32.mrb[2].mxu0 }
 0x5df   : > { %v745_v17 = vadd.f32 %v969_v16, %v893_v15  ;;  %v739_v18 = vpop.f32.mrb[3].mxu0 }
 0x5e0   : > { %v740_v19 = vadd.f32 %v893_v15, %v739_v18 }
 0x5e1   : > { %749 = vst.msk [vmem:[%s286_s23 + $0x8] sm:$0xff] %vm293_vm0, %v745_v17 }
 0x5e2   : > { %748 = vst.msk [vmem:[%s286_s23] sm:$0xff] %vm293_vm0, %v740_v19 }
 0x5e3   : > { %1234 = shalt.err (!%p1231_p4)
}
 0x5e4   : > { %s1235_s6 = scalar_lea.hbm %s1595_s15, 256  ;;  %s1239_s23 = scalar_lea.hbm %s1646_s5, 512 }
 0x5e5   : > { %p1236_p9 = scmp.ne.s32.totalorder %s1595_s15, %s1235_s6  ;;  %p1240_p8 = scmp.lt.u32.totalorder %s1595_s15, %s1646_s5 }
 0x5e6   : > { %p1241_p13 = scmp.lt.u32.totalorder %s1239_s23, %s1235_s6  ;;  %p1243_p10 = scmp.lt.u32.totalorder %s1235_s6, %s1595_s15 }
 0x5e7   : > { %p1237_p0 = pnand %p1236_p9, %p1492_p5 }
 0x5e8   : > { %p1242_p6 = por %p1241_p13, %p1240_p8 }
 0x5e9   : > { %p1238_p11 = pneg %p1237_p0 }
 0x5ea   : > { %p1244_p3 = por %p1243_p10, %p1242_p6 }
 0x5ec   : > { %p1245_p7 = pnand %p1244_p3, %p1238_p11 }
 0x5ee   : > { %1248 = shalt.err (!%p1245_p7)
}
 0x5ef   : > { %s1306_s28 = smov 128   ;;  %s1307_s12 = smov 8  }
 0x5f0   : > { %1016 = dma.vmem_to_hbm [thread:$0]  (%p1492_p5), %s1590_s27, 256, %s1595_s15, %s751_s17, %s1306_s28, %s1306_s28, %s1307_s12  }
 0x5f1 PF: > { %s779_s9 = sand.u32 1, %s1283_s18   ;;  %p1664_p12 = scmp.ne.s32.totalorder %s1651_s25, 0 }
 0x5f2   : > { %p1665_p1 = scmp.ge.s32.totalorder %s1295_s21, 2  ;;  %s780_s22 = scalar_lea.sflag [#allocation4], %s779_s9 }
 0x5f4   : > { %p1033_p2 = pnand %p1665_p1, %p1664_p12 }
 0x5f6   : > { %1278 = dma.done.wait (!%p1033_p2), %s780_s22, 256  }
 0x5f7   : > { %1280 = vsyncadd (!%p1033_p2), %s780_s22, 4294967040  ;;  %p20_p4 = scmp.ge.s32.totalorder %s1478_s14, 4   ;;  %s1666_s18 = smov %s1287_s19 }
 0x5f8   : > { %s1667_s19 = smov %s1291_s20  ;;  %s1668_s20 = smov %s1488_s30 }
 0x5f9   : > { %s1669_s21 = smov %s1478_s14  ;;  %22 = sbr.rel (!%p20_p4) target bundleno = 7 (0x7), region = 97 }
 0x600   :  { %785 = vsyncpa [#allocation3], 1 }
 0x601   :  { %787 = vsyncpa [#allocation3 + $0x1], 1 }
 0x602   :  { %788 = vsyncpa [#allocation6], 1 }
 0x603   :  { %789 = vsyncpa [#allocation9], 1 }
 0x604   :  { %790 = vsyncpa [#allocation4], 1 }
 0x605   :  { %792 = vsyncpa [#allocation4 + $0x1], 1 }

</bundles_post_ra>
